<compile_context>
chip_gen: v6e
topology: v6e:2x2x1
jax: 0.10.0
libtpu: 0.0.40
codegen_flags: <defaults>
</compile_context>

<pallas_src>
import functools

import jax
import jax.numpy as jnp
from jax.experimental import pallas as pl
from jax.experimental.pallas import tpu as pltpu


def _round_up(x, m):
    return (x + m - 1) // m * m


# ----------------------------------------------------------------------------
# Pallas kernel: DNN (relu MLP) + dnn_linear + wide logit add + sigmoid
# ----------------------------------------------------------------------------
def _widedeep_kernel(n_layers, x_ref, wide_ref, *refs):
    # refs = (w1, b1, w2, b2, ..., wf_row, o_ref)
    o_ref = refs[-1]
    p = refs[:-1]

    x = x_ref[...]  # f32 [TB, D_pad]
    for l in range(n_layers):                              # unrolled at trace time
        w = p[2 * l][...]                                  # bf16 [prev_pad, H_pad]
        b = p[2 * l + 1][...]                              # f32  [1, H_pad]
        h = jnp.dot(x.astype(jnp.bfloat16), w,
                    preferred_element_type=jnp.float32)    # MXU, f32 accumulate
        x = jnp.maximum(h + b, 0.0)                        # VPU, f32

    wf = p[2 * n_layers][...]                              # f32 [1, H_last_pad]
    # Final N=1 "matmul" as VPU multiply + XLU lane reduction.
    dnn_logit = jnp.sum(x * wf, axis=-1, keepdims=True)    # [TB, 1]
    logit = dnn_logit + wide_ref[...]                      # wide + deep
    y = jax.nn.sigmoid(logit)                              # PredictionLayer (binary)
    # Lane-dense unmasked store; wrapper slices column 0.
    o_ref[...] = jnp.broadcast_to(y, o_ref.shape)


def widedeep_pallas(dnn_input, wide_logit, dnn_layer_params, w_final, *, batch_tile=256):
    """dnn_input: [B, D] f32; wide_logit: [B, 1] f32;
    dnn_layer_params: list of (W [in,out], b [1,out]); w_final: [H_last, 1]."""
    B, D = dnn_input.shape
    n_layers = len(dnn_layer_params)

    # Batch tile: 256 for real batches (keeps the MXU fed), round-to-8 for tiny ones.
    TB = batch_tile if B >= batch_tile else _round_up(max(B, 8), 8)
    B_pad = _round_up(B, TB)
    D_pad = _round_up(D, 128)

    # Zero-pad activations (padded rows/cols stay zero through the relu chain).
    x = jnp.zeros((B_pad, D_pad), jnp.float32).at[:B, :D].set(dnn_input.astype(jnp.float32))
    wide = jnp.zeros((B_pad, 1), jnp.float32).at[:B, :].set(wide_logit.astype(jnp.float32))

    # Zero-pad weights/biases to 128-lane multiples; matmul weights cast to bf16.
    flat_params = []
    padded_hidden = []
    in_raw, in_pad = D, D_pad
    for (w, b) in dnn_layer_params:
        d_in, h = w.shape
        assert d_in == in_raw
        h_pad = _round_up(h, 128)
        w_p = jnp.zeros((in_pad, h_pad), jnp.bfloat16).at[:d_in, :h].set(w.astype(jnp.bfloat16))
        b_p = jnp.zeros((1, h_pad), jnp.float32).at[:1, :h].set(b.astype(jnp.float32))
        flat_params += [w_p, b_p]
        padded_hidden.append(h_pad)
        in_raw, in_pad = h, h_pad
    h_last = w_final.shape[0]
    wf_row = jnp.zeros((1, in_pad), jnp.float32).at[0, :h_last].set(
        w_final[:, 0].astype(jnp.float32))
    flat_params.append(wf_row)

    grid = (B_pad // TB,)
    in_specs = [
        pl.BlockSpec((TB, D_pad), lambda i: (i, 0)),   # activations: pipelined over batch
        pl.BlockSpec((TB, 1), lambda i: (i, 0)),       # wide logit
    ] + [
        # Weights/biases: full-array blocks, constant index_map -> VMEM-resident.
        pl.BlockSpec(p.shape, lambda i: (0, 0)) for p in flat_params
    ]
    out_specs = pl.BlockSpec((TB, 128), lambda i: (i, 0))

    # Advisory cost estimate (helps XLA schedule the custom call vs. the gathers).
    flops = 0
    in_d = D_pad
    for h_pad in padded_hidden:
        flops += 2 * B_pad * in_d * h_pad
        in_d = h_pad
    flops += 2 * B_pad * in_d
    bytes_accessed = x.size * 4 + wide.size * 4 + B_pad * 128 * 4
    for p in flat_params:
        bytes_accessed += p.size * p.dtype.itemsize
    cost = pl.CostEstimate(flops=int(flops), transcendentals=int(B_pad),
                           bytes_accessed=int(bytes_accessed))

    kernel = functools.partial(_widedeep_kernel, n_layers)
    out = pl.pallas_call(
        kernel,
        out_shape=jax.ShapeDtypeStruct((B_pad, 128), jnp.float32),
        grid=grid,
        in_specs=in_specs,
        out_specs=out_specs,
        compiler_params=pltpu.CompilerParams(dimension_semantics=("parallel",)),
        cost_estimate=cost,
    )(x, wide, *flat_params)

    return out[:B, :1]


# ----------------------------------------------------------------------------
# Glue: feature columns, embedding lookups, parameter init (deterministic)
# ----------------------------------------------------------------------------
def build_params(key, vocab_sizes, emb_dim, dense_dim, hidden_units,
                 emb_init_std=0.1, wide_init_std=0.01):
    n_sparse = len(vocab_sizes)
    keys = jax.random.split(key, 2 * n_sparse + 2 * len(hidden_units) + 2)
    ki = iter(keys)

    # Deep-side embedding tables (create_embedding_matrix for dnn_feature_columns).
    dnn_emb_tables = [jax.random.normal(next(ki), (v, emb_dim), jnp.float32) * emb_init_std
                      for v in vocab_sizes]
    # Wide-side (RecLinear): 1-dim linear embeddings + dense weight.
    wide_emb_tables = [jax.random.normal(next(ki), (v, 1), jnp.float32) * wide_init_std
                       for v in vocab_sizes]
    w_wide_dense = jax.random.normal(next(ki), (dense_dim, 1), jnp.float32) * wide_init_std

    # Deep DNN: Linear(prev, h) + relu per hidden unit.
    input_dim = n_sparse * emb_dim + dense_dim
    layer_params = []
    prev = input_dim
    for h in hidden_units:
        scale = 1.0 / (prev ** 0.5)
        w = jax.random.normal(next(ki), (prev, h), jnp.float32) * scale
        b = jax.random.normal(next(ki), (1, h), jnp.float32) * scale
        layer_params.append((w, b))
        prev = h

    # dnn_linear: Linear(hidden_units[-1], 1, bias=False)
    w_final = jax.random.normal(next(ki), (prev, 1), jnp.float32) / (prev ** 0.5)

    return dnn_emb_tables, wide_emb_tables, w_wide_dense, layer_params, w_final


def combined_dnn_input(sparse_ids, dense_vals, dnn_emb_tables):
    """Embedding lookup + flatten + concat (input_from_feature_columns + combined_dnn_input)."""
    embs = [jnp.take(tbl, sparse_ids[:, i], axis=0) for i, tbl in enumerate(dnn_emb_tables)]
    return jnp.concatenate(embs + [dense_vals], axis=-1)  # [B, input_dim]


def wide_linear_logit(sparse_ids, dense_vals, wide_emb_tables, w_wide_dense):
    """RecLinear.forward: sum of 1-dim sparse embeddings + dense @ weight."""
    logit = jnp.zeros((sparse_ids.shape[0], 1), jnp.float32)
    for i, tbl in enumerate(wide_emb_tables):
        logit = logit + jnp.take(tbl, sparse_ids[:, i], axis=0)    # [B, 1]
    logit = logit + dense_vals @ w_wide_dense                       # [B, 1]
    return logit


def widedeep_reference(dnn_input, wide_logit, layer_params, w_final):
    """Pure-JAX f32 reference of the same forward for validation."""
    x = dnn_input
    for (w, b) in layer_params:
        x = jax.nn.relu(x @ w + b)
    return jax.nn.sigmoid(wide_logit + x @ w_final)


# ----------------------------------------------------------------------------
if __name__ == "__main__":
    key = jax.random.PRNGKey(0)
    k_param, k_ids, k_dense = jax.random.split(key, 3)

    # Small synthetic feature config:
    #   3 sparse features (vocab 10/20/30), emb_dim=8; dense block of dim 4.
    #   input_dim = 3*8 + 4 = 28; dnn_hidden_units = (64, 32).
    batch = 8
    vocab_sizes = (10, 20, 30)
    emb_dim = 8
    dense_dim = 4
    hidden_units = (64, 32)

    (dnn_emb_tables, wide_emb_tables, w_wide_dense,
     layer_params, w_final) = build_params(k_param, vocab_sizes, emb_dim, dense_dim, hidden_units)

    # Synthetic "X": sparse id columns + dense value columns.
    sparse_ids = jnp.stack(
        [
            jax.random.randint(jax.random.fold_in(k_ids, i), (batch,), 0, v)
            for i, v in enumerate(vocab_sizes)
        ],
        axis=1,
    )  # [B, 3] int32
    dense_vals = jax.random.normal(k_dense, (batch, dense_dim), jnp.float32)

    dnn_input = combined_dnn_input(sparse_ids, dense_vals, dnn_emb_tables)          # [B, 28]
    wide_logit = wide_linear_logit(sparse_ids, dense_vals, wide_emb_tables, w_wide_dense)  # [B, 1]

    y = widedeep_pallas(dnn_input, wide_logit, layer_params, w_final)
    y = jax.block_until_ready(y)

    y_ref = widedeep_reference(dnn_input, wide_logit, layer_params, w_final)
    assert y.shape == (batch, 1)
    # bf16 MXU operands vs f32 reference -> loosened tolerance.
    assert jnp.allclose(y, y_ref, atol=1e-2), (y, y_ref)
    assert bool(jnp.all(jnp.isfinite(y)))

    print("KERNEL_OK")
</pallas_src>

<mosaic_0001>
module attributes {stable_mosaic.version = 11 : i64} {
  func.func @_widedeep_kernel(%arg0: i32, %arg1: memref<8x128xf32, #tpu.memory_space<vmem>>, %arg2: memref<8x1xf32, #tpu.memory_space<vmem>>, %arg3: memref<128x128xbf16, #tpu.memory_space<vmem>>, %arg4: memref<1x128xf32, #tpu.memory_space<vmem>>, %arg5: memref<128x128xbf16, #tpu.memory_space<vmem>>, %arg6: memref<1x128xf32, #tpu.memory_space<vmem>>, %arg7: memref<1x128xf32, #tpu.memory_space<vmem>>, %arg8: memref<8x128xf32, #tpu.memory_space<vmem>>) attributes {dimension_semantics = [#tpu.dimension_semantics<parallel>], iteration_bounds = array<i64: 1>, scalar_prefetch = 0 : i64, scratch_operands = 0 : i64, tpu.core_type = #tpu.core_type<tc>, window_params = [{transform_indices = @transform_0, window_bounds = array<i64: 8, 128>}, {transform_indices = @transform_1, window_bounds = array<i64: 8, 1>}, {pipeline_mode = #tpu.pipeline_mode<synchronous>, transform_indices = @transform_2, window_bounds = array<i64: 128, 128>}, {pipeline_mode = #tpu.pipeline_mode<synchronous>, transform_indices = @transform_3, window_bounds = array<i64: 1, 128>}, {pipeline_mode = #tpu.pipeline_mode<synchronous>, transform_indices = @transform_4, window_bounds = array<i64: 128, 128>}, {pipeline_mode = #tpu.pipeline_mode<synchronous>, transform_indices = @transform_5, window_bounds = array<i64: 1, 128>}, {pipeline_mode = #tpu.pipeline_mode<synchronous>, transform_indices = @transform_6, window_bounds = array<i64: 1, 128>}, {transform_indices = @transform_7, window_bounds = array<i64: 8, 128>}]} {
    %c0 = arith.constant 0 : index
    %c0_0 = arith.constant 0 : index
    %0 = vector.load %arg1[%c0, %c0_0] : memref<8x128xf32, #tpu.memory_space<vmem>>, vector<8x128xf32>
    %c0_1 = arith.constant 0 : index
    %c0_2 = arith.constant 0 : index
    %1 = vector.load %arg3[%c0_1, %c0_2] : memref<128x128xbf16, #tpu.memory_space<vmem>>, vector<128x128xbf16>
    %c0_3 = arith.constant 0 : index
    %c0_4 = arith.constant 0 : index
    %2 = vector.load %arg4[%c0_3, %c0_4] : memref<1x128xf32, #tpu.memory_space<vmem>>, vector<1x128xf32>
    %3 = arith.truncf %0 : vector<8x128xf32> to vector<8x128xbf16>
    %cst = arith.constant dense<0.000000e+00> : vector<8x128xf32>
    %4 = tpu.matmul %3, %1, %cst {dimension_numbers = #tpu.dot_dimension_numbers<[1], [0], [0], [1], [0, 0, 1, 1], [], []>} : vector<8x128xbf16>, vector<128x128xbf16>, vector<8x128xf32> -> vector<8x128xf32>
    %5 = vector.broadcast %2 : vector<1x128xf32> to vector<8x128xf32>
    %6 = arith.addf %4, %5 : vector<8x128xf32>
    %cst_5 = arith.constant 0.000000e+00 : f32
    %7 = vector.broadcast %cst_5 : f32 to vector<8x128xf32>
    %8 = arith.maximumf %6, %7 : vector<8x128xf32>
    %c0_6 = arith.constant 0 : index
    %c0_7 = arith.constant 0 : index
    %9 = vector.load %arg5[%c0_6, %c0_7] : memref<128x128xbf16, #tpu.memory_space<vmem>>, vector<128x128xbf16>
    %c0_8 = arith.constant 0 : index
    %c0_9 = arith.constant 0 : index
    %10 = vector.load %arg6[%c0_8, %c0_9] : memref<1x128xf32, #tpu.memory_space<vmem>>, vector<1x128xf32>
    %11 = arith.truncf %8 : vector<8x128xf32> to vector<8x128xbf16>
    %cst_10 = arith.constant dense<0.000000e+00> : vector<8x128xf32>
    %12 = tpu.matmul %11, %9, %cst_10 {dimension_numbers = #tpu.dot_dimension_numbers<[1], [0], [0], [1], [0, 0, 1, 1], [], []>} : vector<8x128xbf16>, vector<128x128xbf16>, vector<8x128xf32> -> vector<8x128xf32>
    %13 = vector.broadcast %10 : vector<1x128xf32> to vector<8x128xf32>
    %14 = arith.addf %12, %13 : vector<8x128xf32>
    %cst_11 = arith.constant 0.000000e+00 : f32
    %15 = vector.broadcast %cst_11 : f32 to vector<8x128xf32>
    %16 = arith.maximumf %14, %15 : vector<8x128xf32>
    %c0_12 = arith.constant 0 : index
    %c0_13 = arith.constant 0 : index
    %17 = vector.load %arg7[%c0_12, %c0_13] : memref<1x128xf32, #tpu.memory_space<vmem>>, vector<1x128xf32>
    %18 = vector.broadcast %17 : vector<1x128xf32> to vector<8x128xf32>
    %19 = arith.mulf %16, %18 : vector<8x128xf32>
    %cst_14 = arith.constant dense<0.000000e+00> : vector<8xf32>
    %20 = vector.multi_reduction <add>, %19, %cst_14 [1] : vector<8x128xf32> to vector<8xf32>
    %21 = vector.shape_cast %20 : vector<8xf32> to vector<8x1xf32>
    %c0_15 = arith.constant 0 : index
    %c0_16 = arith.constant 0 : index
    %22 = vector.load %arg2[%c0_15, %c0_16] : memref<8x1xf32, #tpu.memory_space<vmem>>, vector<8x1xf32>
    %23 = arith.addf %21, %22 : vector<8x1xf32>
    %24 = arith.negf %23 : vector<8x1xf32>
    %25 = math.exp %24 : vector<8x1xf32>
    %cst_17 = arith.constant 1.000000e+00 : f32
    %26 = vector.broadcast %cst_17 : f32 to vector<8x1xf32>
    %27 = arith.addf %26, %25 : vector<8x1xf32>
    %28 = arith.divf %26, %27 : vector<8x1xf32>
    %29 = vector.shape_cast %28 : vector<8x1xf32> to vector<8x1xf32>
    %30 = vector.broadcast %29 : vector<8x1xf32> to vector<8x128xf32>
    %c0_18 = arith.constant 0 : index
    %c0_19 = arith.constant 0 : index
    %31 = vector.load %arg8[%c0_18, %c0_19] : memref<8x128xf32, #tpu.memory_space<vmem>>, vector<8x128xf32>
    tpu.vector_store %arg8[%c0_18, %c0_19], %30 {strides = array<i32>} : memref<8x128xf32, #tpu.memory_space<vmem>>, vector<8x128xf32>,
    return
  }
  func.func @transform_0(%arg0: i32) -> (i32, i32) {
    %c0_i32 = arith.constant 0 : i32
    %c0_i32_0 = arith.constant 0 : i32
    return %arg0, %c0_i32 : i32, i32
  }
  func.func @transform_1(%arg0: i32) -> (i32, i32) {
    %c0_i32 = arith.constant 0 : i32
    %c0_i32_0 = arith.constant 0 : i32
    return %arg0, %c0_i32 : i32, i32
  }
  func.func @transform_2(%arg0: i32) -> (i32, i32) {
    %c0_i32 = arith.constant 0 : i32
    %c0_i32_0 = arith.constant 0 : i32
    %c0_i32_1 = arith.constant 0 : i32
    return %c0_i32, %c0_i32_0 : i32, i32
  }
  func.func @transform_3(%arg0: i32) -> (i32, i32) {
    %c0_i32 = arith.constant 0 : i32
    %c0_i32_0 = arith.constant 0 : i32
    %c0_i32_1 = arith.constant 0 : i32
    return %c0_i32, %c0_i32_0 : i32, i32
  }
  func.func @transform_4(%arg0: i32) -> (i32, i32) {
    %c0_i32 = arith.constant 0 : i32
    %c0_i32_0 = arith.constant 0 : i32
    %c0_i32_1 = arith.constant 0 : i32
    return %c0_i32, %c0_i32_0 : i32, i32
  }
  func.func @transform_5(%arg0: i32) -> (i32, i32) {
    %c0_i32 = arith.constant 0 : i32
    %c0_i32_0 = arith.constant 0 : i32
    %c0_i32_1 = arith.constant 0 : i32
    return %c0_i32, %c0_i32_0 : i32, i32
  }
  func.func @transform_6(%arg0: i32) -> (i32, i32) {
    %c0_i32 = arith.constant 0 : i32
    %c0_i32_0 = arith.constant 0 : i32
    %c0_i32_1 = arith.constant 0 : i32
    return %c0_i32, %c0_i32_0 : i32, i32
  }
  func.func @transform_7(%arg0: i32) -> (i32, i32) {
    %c0_i32 = arith.constant 0 : i32
    %c0_i32_0 = arith.constant 0 : i32
    return %arg0, %c0_i32 : i32, i32
  }
}

</mosaic_0001>

<bundles_post_ra>
// kernel: tpu_custom_call.1
= control target key start
LH: loop header
LB: loop body
LE: loop exit
PB: predicated region body
PF: predicated region fallthrough
CT: control target
= control target key end

     0   :  { %12 = vsyncpa [#allocation3], 0  ;;  %s568_s0 = inlined_call_operand.vmem [shape: f32[8,128], index: 0, kind: input, shape index: {}]   ;;  %s569_s1 = inlined_call_operand.vmem [shape: f32[8,1], index: 1, kind: input, shape index: {}]   ;;  %s570_s2 = inlined_call_operand.hbm [shape: bf16[128,128], index: 2, kind: input, shape index: {}]   ;;  %s571_s3 = inlined_call_operand.vmem [shape: f32[1,128], index: 3, kind: input, shape index: {}]   ;;  %s572_s4 = inlined_call_operand.hbm [shape: bf16[128,128], index: 4, kind: input, shape index: {}]   ;;  %s573_s5 = inlined_call_operand.vmem [shape: f32[1,128], index: 5, kind: input, shape index: {}]   ;;  %s574_s6 = inlined_call_operand.vmem [shape: f32[1,128], index: 6, kind: input, shape index: {}]   ;;  %s575_s7 = inlined_call_operand.hbm [shape: f32[8,128], index: 7, kind: output, shape index: {}]  }
   0x1   :  { %13 = vsyncpa [#allocation6], 0 }
   0x2   :  { %14 = vsyncpa [#allocation4], 0  ;;  %s496_s24 = smov [#allocation2]  }
   0x3   :  { %s24_s25 = sshll.u32 %s496_s24, 4  ;;  %s25_s25 = int_to_ptr.vmem [resolvable:$true] %s24_s25 }
   0x4   :  { %s438_s26 = scalar_lea.vmem %s25_s25, 1024  ;;  %p443_p1 = scmp.lt.s32.totalorder %s25_s25, %s25_s25 }
   0x5   :  { %p439_p0 = scmp.ne.s32.totalorder %s25_s25, %s438_s26  ;;  %p444_p2 = scmp.lt.s32.totalorder %s438_s26, %s438_s26 }
   0x7   :  { %p445_p3 = por %p444_p2, %p443_p1 }
   0x9   :  { %p446_p4 = pnand %p445_p3, %p439_p0 }
   0xb   :  { %449 = shalt.err (!%p446_p4)
}
   0xc   :  { %s497_s27 = smov 64   ;;  %s498_s28 = smov 4  }
   0xd   :  { %30 = dma.hbm_to_vmem [thread:$0]  %s570_s2, 1024, %s25_s25, [#allocation3], %s497_s27, %s497_s27, %s498_s28  }
   0xe   :  { %s499_s8 = smov [#allocation5]  }
   0xf   :  { %s38_s9 = sshll.u32 %s499_s8, 4  ;;  %s39_s9 = int_to_ptr.vmem [resolvable:$true] %s38_s9 }
  0x10   :  { %s458_s10 = scalar_lea.vmem %s39_s9, 1024  ;;  %p463_p6 = scmp.lt.s32.totalorder %s39_s9, %s39_s9 }
  0x11   :  { %p459_p5 = scmp.ne.s32.totalorder %s39_s9, %s458_s10  ;;  %p464_p7 = scmp.lt.s32.totalorder %s458_s10, %s458_s10 }
  0x13   :  { %p465_p8 = por %p464_p7, %p463_p6 }
  0x15   :  { %p466_p9 = pnand %p465_p8, %p459_p5 }
  0x17   :  { %469 = shalt.err (!%p466_p9)
}
  0x18   :  { %44 = dma.hbm_to_vmem [thread:$0]  %s572_s4, 1024, %s39_s9, [#allocation6], %s497_s27, %s497_s27, %s498_s28  }
  0x19   :  { %490 = dma.done.wait [#allocation3], 1024  }
  0x1a   :  { %491 = vsyncadd [#allocation3], 4294966272 }
  0x1b   :  { %492 = dma.done.wait [#allocation6], 1024  }
  0x1c   :  { %493 = vsyncadd [#allocation6], 4294966272  ;;  %v500_v0 = vmov 0.0   ;;  %vm501_vm0 = vmmov 0   ;;  %v410_v1 = vld [vmem:[#allocation2 + $0x38] sm:$0xff]   ;;  %v411_v2 = vld [vmem:[#allocation2 + $0x30] sm:$0xff]  }
  0x1d   :  { %361 = vmatprep.subr.bf16.mxu0 %v500_v0  ;;  %377 = vmatprep.mubr.msk.bf16.mxu0 %vm501_vm0, %v500_v0  ;;  %v412_v3 = vld [vmem:[#allocation2 + $0x28] sm:$0xff]   ;;  %v418_v4 = vld [vmem:[#allocation5 + $0x38] sm:$0xff]   ;;  %v413_v5 = vld [vmem:[#allocation2 + $0x20] sm:$0xff]   ;;  %v502_v36 = vmov 0  }
  0x1e   :  { %381 = vmatprep.subr.bf16.mxu1 %v500_v0  ;;  %397 = vmatprep.mubr.msk.bf16.mxu1 %vm501_vm0, %v500_v0  ;;  %v419_v6 = vld [vmem:[#allocation5 + $0x30] sm:$0xff]   ;;  %v414_v7 = vld [vmem:[#allocation2 + $0x18] sm:$0xff]   ;;  %v420_v8 = vld [vmem:[#allocation5 + $0x28] sm:$0xff]  }
  0x1f   :  { %362 = vmatpush3.bf16.msra.mxu0 %v410_v1  ;;  %382 = vmatpush3.bf16.msra.mxu1 %v418_v4  ;;  %v415_v9 = vld [vmem:[#allocation2 + $0x10] sm:$0xff]   ;;  %v421_v10 = vld [vmem:[#allocation5 + $0x20] sm:$0xff]   ;;  %v416_v11 = vld [vmem:[#allocation2 + $0x8] sm:$0xff]  }
  0x20   :  { %363 = vmatprep.subr.bf16.mxu0 %v500_v0  ;;  %383 = vmatprep.subr.bf16.mxu1 %v500_v0  ;;  %v422_v12 = vld [vmem:[#allocation5 + $0x18] sm:$0xff]   ;;  %v417_v13 = vld [vmem:[#allocation2] sm:$0xff]   ;;  %v423_v15 = vld [vmem:[#allocation5 + $0x10] sm:$0xff]  }
  0x21   :  { %v56_v14 = vld [vmem:[%s568_s0] sm:$0xff]  ;;  %v424_v17 = vld [vmem:[#allocation5 + $0x8] sm:$0xff]   ;;  %409 = vset.pattern.permute.xlu0 %v502_v36 }
  0x22   :  { %v74_v16 = vpack.c.bf16 %v56_v14, %v56_v14  ;;  %v425_v18 = vld [vmem:[#allocation5] sm:$0xff]  }
  0x23   :  { %364 = vmatpush3.bf16.msra.mxu0 %v411_v2  ;;  %384 = vmatpush3.bf16.msra.mxu1 %v419_v6  ;;  %v323_v19 = vld [vmem:[%s571_s3] ss:$0 sm:$0xff] }
  0x24   :  { %365 = vmatprep.subr.bf16.mxu0 %v500_v0  ;;  %385 = vmatprep.subr.bf16.mxu1 %v500_v0  ;;  %v332_v27 = vld [vmem:[%s573_s5] ss:$0 sm:$0xff]  ;;  %s503_s5 = smov [#allocation7]  }
  0x25   :  { %v341_v31 = vld [vmem:[%s574_s6] ss:$0 sm:$0xff]  ;;  %s313_s6 = sshll.u32 %s503_s5, 4  ;;  %s314_s6 = int_to_ptr.vmem [resolvable:$true] %s313_s6 }
  0x26   :  { %v293_v37 = vld [vmem:[%s569_s1] sm:$0xff]  ;;  %s470_s19 = scalar_lea.vmem %s314_s6, 128  ;;  %p475_p11 = scmp.lt.s32.totalorder %s314_s6, %s314_s6 }
  0x27   :  { %366 = vmatpush3.bf16.msra.mxu0 %v412_v3  ;;  %386 = vmatpush3.bf16.msra.mxu1 %v420_v8  ;;  %p471_p10 = scmp.ne.s32.totalorder %s314_s6, %s470_s19  ;;  %p476_p12 = scmp.lt.s32.totalorder %s470_s19, %s470_s19 }
  0x28   :  { %367 = vmatprep.subr.bf16.mxu0 %v500_v0  ;;  %387 = vmatprep.subr.bf16.mxu1 %v500_v0 }
  0x29   :  { %p477_p13 = por %p476_p12, %p475_p11 }
  0x2b   :  { %368 = vmatpush3.bf16.msra.mxu0 %v413_v5  ;;  %388 = vmatpush3.bf16.msra.mxu1 %v421_v10  ;;  %p478_p0 = pnand %p477_p13, %p471_p10 }
  0x2c   :  { %369 = vmatprep.subr.bf16.mxu0 %v500_v0  ;;  %389 = vmatprep.subr.bf16.mxu1 %v500_v0 }
  0x2f   :  { %370 = vmatpush3.bf16.msra.mxu0 %v414_v7  ;;  %390 = vmatpush3.bf16.msra.mxu1 %v422_v12 }
  0x30   :  { %371 = vmatprep.subr.bf16.mxu0 %v500_v0  ;;  %391 = vmatprep.subr.bf16.mxu1 %v500_v0 }
  0x33   :  { %372 = vmatpush3.bf16.msra.mxu0 %v415_v9  ;;  %392 = vmatpush3.bf16.msra.mxu1 %v423_v15 }
  0x34   :  { %373 = vmatprep.subr.bf16.mxu0 %v500_v0  ;;  %393 = vmatprep.subr.bf16.mxu1 %v500_v0 }
  0x37   :  { %374 = vmatpush3.bf16.msra.mxu0 %v416_v11  ;;  %394 = vmatpush3.bf16.msra.mxu1 %v424_v17 }
  0x38   :  { %375 = vmatprep.subr.bf16.mxu0 %v500_v0  ;;  %395 = vmatprep.subr.bf16.mxu1 %v500_v0 }
  0x3b   :  { %376 = vmatpush3.bf16.msra.mxu0 %v417_v13  ;;  %396 = vmatpush3.bf16.msra.mxu1 %v425_v18 }
  0x3e   :  { %378 = vmatmul.mubr.bf16.vlgmr.msra.gmra.mxu0 %v74_v16 }
  0xfe   :  { %v163_v20 = vpop.f32.mrf.mxu0 }
  0xff   :  { %v164_v21 = vadd.f32 %v323_v19, %v163_v20 }
 0x100   :  { %v379_v22 = vpop.f32.mrf.mxu0 }
 0x101   :  { %v169_v23 = vmax.f32 %v164_v21, 0.0 }
 0x102   :  { %v166_v24 = vpop.f32.mrf.mxu0 }
 0x103   :  { %v187_v25 = vpack.c.bf16 %v169_v23, %v169_v23 }
 0x104   :  { %v380_v26 = vpop.f32.mrf.mxu0 }
 0x105   :  { %398 = vmatmul.mubr.bf16.vlgmr.msra.gmra.mxu1 %v187_v25 }
 0x1c5   :  { %v276_v28 = vpop.f32.mrf.mxu1 }
 0x1c6   :  { %v277_v29 = vadd.f32 %v332_v27, %v276_v28 }
 0x1c7   :  { %v399_v30 = vpop.f32.mrf.mxu1 }
 0x1c8   :  { %v282_v32 = vmax.f32 %v277_v29, 0.0 }
 0x1c9   :  { %v279_v33 = vpop.f32.mrf.mxu1 }
 0x1ca   :  { %v290_v34 = vmul.f32 %v341_v31, %v282_v32 }
 0x1cb   :  { %v400_v35 = vpop.f32.mrf.mxu1 }
 0x1cc   :  { %291 = vadd.xlane.f32.xlu0 %v290_v34 }
 0x255   :  { %v292_v38 = vpop.xlane.xlu0 %291 }
 0x256   :  { %v294_v39 = vadd.f32 %v293_v37, %v292_v38 }
 0x258   :  { %v342_v40 = vmul.f32 -1.442695, %v294_v39 }
 0x25a   :  { %426 = vpow2.f32 %v342_v40 }
 0x267   :  { %v427_v41 = vpop.eup %426 }
 0x268   :  { %v298_v42 = vadd.f32 1.0, %v427_v41 }
 0x26a   :  { %428 = vrcp.f32 %v298_v42 }
 0x277   :  { %v429_v43 = vpop.eup %428 }
 0x278   :  { %303 = vperm.xlu0 %409, %v429_v43  }
 0x2f3   :  { %v304_v44 = vpop.permute.xlu0 %303 }
 0x2f4   :  { %306 = vst [vmem:[#allocation7] sm:$0xff] %v304_v44 }
 0x2f5   :  { %481 = shalt.err (!%p478_p0)
}
 0x2f6   :  { %316 = dma.vmem_to_hbm [thread:$0]  %s314_s6, 128, %s575_s7, [#allocation4]  }
 0x2f7   :  { %494 = dma.done.wait [#allocation4], 128  }
 0x2f8   :  { %495 = vsyncadd [#allocation4], 4294967168 }
 0x2f9   :  { %320 = vsyncpa [#allocation3], 1 }
 0x2fa   :  { %321 = vsyncpa [#allocation6], 1 }
 0x2fb   :  { %322 = vsyncpa [#allocation4], 1 }

</bundles_post_ra>
